<compile_context>
chip_gen: v7x
topology: tpu7x:2x2x1
jax: 0.10.0
libtpu: 0.0.40
codegen_flags: <defaults>
</compile_context>

<pallas_src>
import jax
import jax.numpy as jnp
from jax.experimental import pallas as pl
from jax.experimental.pallas import tpu as pltpu


def _round_up(x, m):
    return ((x + m - 1) // m) * m


def _gnn_mp_kernel(xs_ref, xt_ref, ws_ref, wt_ref, etype_ref, tgt_ref, out_ref):
    # xs_ref / xt_ref : [TILE_E, H]   bf16 gathered source / target node states
    # ws_ref / wt_ref : [H, T*H]      bf16 per-type weights stacked along lanes
    # etype_ref       : [TILE_E, 1]   int32 edge types in 1..T (0 = padding)
    # tgt_ref         : [1, TILE_E]   int32 target node ids (global)
    # out_ref         : [TILE_N, H]   f32 accumulator (resident across edge axis)
    n_idx = pl.program_id(0)
    e_idx = pl.program_id(1)

    tile_n, hidden = out_ref.shape
    tile_e = xs_ref.shape[0]
    num_types = ws_ref.shape[1] // hidden

    @pl.when(e_idx == 0)
    def _init():
        out_ref[...] = jnp.zeros_like(out_ref)

    # All-type messages in one wide MXU matmul (bf16 operands, f32 accumulate).
    y = jnp.dot(xs_ref[...], ws_ref[...], preferred_element_type=jnp.float32)
    y = y + jnp.dot(xt_ref[...], wt_ref[...], preferred_element_type=jnp.float32)
    # y: [TILE_E, T*H]; column block t is "message if this edge had type t+1".

    # Per-edge type selection (padding / unknown types contribute zero).
    etype = etype_ref[...]                                       # [TILE_E, 1]
    msgs = jnp.zeros((tile_e, hidden), jnp.float32)
    for t in range(num_types):                                   # static, small T
        mask = (etype == (t + 1)).astype(jnp.float32)            # [TILE_E, 1]
        msgs = msgs + mask * y[:, t * hidden:(t + 1) * hidden]

    # Scatter-add by target node as a one-hot matmul over this node tile.
    node_ids = jax.lax.broadcasted_iota(jnp.int32, (tile_n, tile_e), 0) + n_idx * tile_n
    onehot = (node_ids == tgt_ref[...]).astype(jnp.bfloat16)     # [TILE_N, TILE_E]
    out_ref[...] += jnp.dot(onehot, msgs.astype(jnp.bfloat16),
                            preferred_element_type=jnp.float32)


def prepare_weights(weights):
    """One-time weight prep (call at model init, NOT per forward).

    weights: [T, H, 2H]  per-type nn.Linear(2H, H, bias=False) weights (PyTorch out,in).
    Returns (w_src, w_tgt): each [H, T*H] bf16, per-type W^T halves stacked along lanes.
    """
    num_types, hidden, two_h = weights.shape
    assert two_h == 2 * hidden
    w_t = jnp.transpose(weights, (0, 2, 1))                              # [T, 2H, H] == W^T
    w_src = jnp.transpose(w_t[:, :hidden, :], (1, 0, 2)).reshape(hidden, num_types * hidden)
    w_tgt = jnp.transpose(w_t[:, hidden:, :], (1, 0, 2)).reshape(hidden, num_types * hidden)
    return w_src.astype(jnp.bfloat16), w_tgt.astype(jnp.bfloat16)


def residual_gnn_message_passing(state_embedding, typed_edges, w_src, w_tgt,
                                 num_edge_types, *, tile_e=512, tile_n=128):
    """state_embedding: [N, H] f32; typed_edges: [3, E] int (type 1..T, src, tgt)."""
    num_nodes, hidden = state_embedding.shape
    num_edges_total = typed_edges.shape[1]
    num_types = num_edge_types

    etype = typed_edges[0].astype(jnp.int32)
    src = typed_edges[1].astype(jnp.int32)
    tgt = typed_edges[2].astype(jnp.int32)

    # Glue: embedding gather; the concat is eliminated (separate src/tgt operands).
    x_src = state_embedding[src].astype(jnp.bfloat16)                    # [E, H]
    x_tgt = state_embedding[tgt].astype(jnp.bfloat16)                    # [E, H]

    # Tile sizes / padding. Padded edges get type 0 -> zero message, tgt 0 -> adds zero.
    tile_e = min(tile_e, _round_up(num_edges_total, 128))
    e_pad = _round_up(num_edges_total, tile_e)
    tile_n = min(tile_n, _round_up(num_nodes, 8))
    n_pad = _round_up(num_nodes, tile_n)

    pe = e_pad - num_edges_total
    if pe:
        x_src = jnp.pad(x_src, ((0, pe), (0, 0)))
        x_tgt = jnp.pad(x_tgt, ((0, pe), (0, 0)))
        etype = jnp.pad(etype, (0, pe))
        tgt = jnp.pad(tgt, (0, pe))

    out = pl.pallas_call(
        _gnn_mp_kernel,
        out_shape=jax.ShapeDtypeStruct((n_pad, hidden), jnp.float32),
        grid=(n_pad // tile_n, e_pad // tile_e),
        in_specs=[
            pl.BlockSpec((tile_e, hidden), lambda n, e: (e, 0)),             # x_src
            pl.BlockSpec((tile_e, hidden), lambda n, e: (e, 0)),             # x_tgt
            pl.BlockSpec((hidden, num_types * hidden), lambda n, e: (0, 0)),  # w_src
            pl.BlockSpec((hidden, num_types * hidden), lambda n, e: (0, 0)),  # w_tgt
            pl.BlockSpec((tile_e, 1), lambda n, e: (e, 0)),                  # etype
            pl.BlockSpec((1, tile_e), lambda n, e: (0, e)),                  # tgt
        ],
        out_specs=pl.BlockSpec((tile_n, hidden), lambda n, e: (n, 0)),
        compiler_params=pltpu.CompilerParams(
            dimension_semantics=("parallel", "arbitrary"),
            vmem_limit_bytes=64 * 1024 * 1024,
        ),
    )(x_src, x_tgt, w_src, w_tgt, etype.reshape(e_pad, 1), tgt.reshape(1, e_pad))
    return out[:num_nodes]


def _reference(state_embedding, typed_edges, weights):
    """Pure-JAX f32 mirror of the PyTorch forward (scatter reduce = sum)."""
    num_nodes, hidden = state_embedding.shape
    num_types = weights.shape[0]
    src = typed_edges[1]
    tgt = typed_edges[2]
    x = jnp.concatenate([state_embedding[src], state_embedding[tgt]], axis=1)
    out = jnp.zeros((num_nodes, hidden), jnp.float32)
    for t in range(1, num_types + 1):
        mask = typed_edges[0] == t
        msg = x @ weights[t - 1].T
        msg = jnp.where(mask[:, None], msg, 0.0)
        out = out.at[tgt].add(msg)
    return out


if __name__ == "__main__":
    key = jax.random.PRNGKey(0)
    hidden = 32
    num_nodes = 16
    num_edge_types = 3       # module's `num_edges` (== number of edge TYPES)
    num_edges_total = 24     # number of edges in typed_edges

    k1, k2, k3, k4, k5 = jax.random.split(key, 5)
    state_embedding = jax.random.normal(k1, (num_nodes, hidden), jnp.float32)
    etype = jax.random.randint(k2, (num_edges_total,), 1, num_edge_types + 1)
    src = jax.random.randint(k3, (num_edges_total,), 0, num_nodes)
    tgt = jax.random.randint(k4, (num_edges_total,), 0, num_nodes)
    typed_edges = jnp.stack([etype, src, tgt], axis=0).astype(jnp.int32)

    # deterministic init mimicking nn.Linear(2H, H, bias=False): U(-1/sqrt(2H), 1/sqrt(2H))
    bound = 1.0 / (2 * hidden) ** 0.5
    weights = jax.random.uniform(
        k5, (num_edge_types, hidden, 2 * hidden), jnp.float32, minval=-bound, maxval=bound
    )

    # One-time weight prep (init-time, not hot path).
    w_src, w_tgt = prepare_weights(weights)

    out = residual_gnn_message_passing(
        state_embedding, typed_edges, w_src, w_tgt, num_edge_types
    )
    jax.block_until_ready(out)

    ref = _reference(state_embedding, typed_edges, weights)
    assert out.shape == (num_nodes, hidden)
    # bf16 MXU operands vs f32 reference -> looser tolerance
    assert jnp.allclose(out, ref, atol=5e-2, rtol=5e-2), "kernel does not match reference"
    print("KERNEL_OK")
</pallas_src>

<mosaic_0001>
module attributes {stable_mosaic.version = 11 : i64} {
  func.func @_gnn_mp_kernel(%arg0: i32, %arg1: i32, %arg2: memref<128x32xbf16, #tpu.memory_space<vmem>>, %arg3: memref<128x32xbf16, #tpu.memory_space<vmem>>, %arg4: memref<32x96xbf16, #tpu.memory_space<vmem>>, %arg5: memref<32x96xbf16, #tpu.memory_space<vmem>>, %arg6: memref<128x1xi32, #tpu.memory_space<vmem>>, %arg7: memref<1x128xi32, #tpu.memory_space<vmem>>, %arg8: memref<16x32xf32, #tpu.memory_space<vmem>>) attributes {dimension_semantics = [#tpu.dimension_semantics<parallel>, #tpu.dimension_semantics<arbitrary>], iteration_bounds = array<i64: 1, 1>, scalar_prefetch = 0 : i64, scratch_operands = 0 : i64, tpu.core_type = #tpu.core_type<tc>, window_params = [{transform_indices = @transform_0, window_bounds = array<i64: 128, 32>}, {transform_indices = @transform_1, window_bounds = array<i64: 128, 32>}, {pipeline_mode = #tpu.pipeline_mode<synchronous>, transform_indices = @transform_2, window_bounds = array<i64: 32, 96>}, {pipeline_mode = #tpu.pipeline_mode<synchronous>, transform_indices = @transform_3, window_bounds = array<i64: 32, 96>}, {transform_indices = @transform_4, window_bounds = array<i64: 128, 1>}, {transform_indices = @transform_5, window_bounds = array<i64: 1, 128>}, {transform_indices = @transform_6, window_bounds = array<i64: 16, 32>}]} {
    %c0_i32 = arith.constant 0 : i32
    %0 = arith.cmpi eq, %arg1, %c0_i32 : i32
    %1 = arith.extui %0 : i1 to i32
    %c0_i32_0 = arith.constant 0 : i32
    %2 = arith.cmpi ne, %1, %c0_i32_0 : i32
    scf.if %2 {
      %cst_19 = arith.constant 0.000000e+00 : f32
      %51 = vector.broadcast %cst_19 : f32 to vector<16x32xf32>
      %c0_20 = arith.constant 0 : index
      %c0_21 = arith.constant 0 : index
      %52 = vector.load %arg8[%c0_20, %c0_21] : memref<16x32xf32, #tpu.memory_space<vmem>>, vector<16x32xf32>
      tpu.vector_store %arg8[%c0_20, %c0_21], %51 {strides = array<i32>} : memref<16x32xf32, #tpu.memory_space<vmem>>, vector<16x32xf32>,
    } else {
    }
    %c0 = arith.constant 0 : index
    %c0_1 = arith.constant 0 : index
    %3 = vector.load %arg2[%c0, %c0_1] : memref<128x32xbf16, #tpu.memory_space<vmem>>, vector<128x32xbf16>
    %c0_2 = arith.constant 0 : index
    %c0_3 = arith.constant 0 : index
    %4 = vector.load %arg4[%c0_2, %c0_3] : memref<32x96xbf16, #tpu.memory_space<vmem>>, vector<32x96xbf16>
    %cst = arith.constant dense<0.000000e+00> : vector<128x96xf32>
    %5 = tpu.matmul %3, %4, %cst {dimension_numbers = #tpu.dot_dimension_numbers<[1], [0], [0], [1], [0, 0, 1, 1], [], []>} : vector<128x32xbf16>, vector<32x96xbf16>, vector<128x96xf32> -> vector<128x96xf32>
    %c0_4 = arith.constant 0 : index
    %c0_5 = arith.constant 0 : index
    %6 = vector.load %arg3[%c0_4, %c0_5] : memref<128x32xbf16, #tpu.memory_space<vmem>>, vector<128x32xbf16>
    %c0_6 = arith.constant 0 : index
    %c0_7 = arith.constant 0 : index
    %7 = vector.load %arg5[%c0_6, %c0_7] : memref<32x96xbf16, #tpu.memory_space<vmem>>, vector<32x96xbf16>
    %cst_8 = arith.constant dense<0.000000e+00> : vector<128x96xf32>
    %8 = tpu.matmul %6, %7, %cst_8 {dimension_numbers = #tpu.dot_dimension_numbers<[1], [0], [0], [1], [0, 0, 1, 1], [], []>} : vector<128x32xbf16>, vector<32x96xbf16>, vector<128x96xf32> -> vector<128x96xf32>
    %9 = arith.addf %5, %8 : vector<128x96xf32>
    %c0_9 = arith.constant 0 : index
    %c0_10 = arith.constant 0 : index
    %10 = vector.load %arg6[%c0_9, %c0_10] : memref<128x1xi32, #tpu.memory_space<vmem>>, vector<128x1xi32>
    %cst_11 = arith.constant 0.000000e+00 : f32
    %11 = vector.broadcast %cst_11 : f32 to vector<128x32xf32>
    %c1_i32 = arith.constant 1 : i32
    %12 = vector.broadcast %c1_i32 : i32 to vector<128x1xi32>
    %13 = arith.cmpi eq, %10, %12 : vector<128x1xi32>
    %14 = arith.extui %13 : vector<128x1xi1> to vector<128x1xi32>
    %15 = arith.sitofp %14 : vector<128x1xi32> to vector<128x1xf32>
    %16 = vector.extract_strided_slice %9 {offsets = [0, 0], sizes = [128, 32], strides = [1, 1]} : vector<128x96xf32> to vector<128x32xf32>
    %17 = vector.broadcast %15 : vector<128x1xf32> to vector<128x32xf32>
    %18 = arith.mulf %17, %16 : vector<128x32xf32>
    %19 = arith.addf %11, %18 : vector<128x32xf32>
    %c2_i32 = arith.constant 2 : i32
    %20 = vector.broadcast %c2_i32 : i32 to vector<128x1xi32>
    %21 = arith.cmpi eq, %10, %20 : vector<128x1xi32>
    %22 = arith.extui %21 : vector<128x1xi1> to vector<128x1xi32>
    %23 = arith.sitofp %22 : vector<128x1xi32> to vector<128x1xf32>
    %24 = vector.extract_strided_slice %9 {offsets = [0, 32], sizes = [128, 32], strides = [1, 1]} : vector<128x96xf32> to vector<128x32xf32>
    %25 = vector.broadcast %23 : vector<128x1xf32> to vector<128x32xf32>
    %26 = arith.mulf %25, %24 : vector<128x32xf32>
    %27 = arith.addf %19, %26 : vector<128x32xf32>
    %c3_i32 = arith.constant 3 : i32
    %28 = vector.broadcast %c3_i32 : i32 to vector<128x1xi32>
    %29 = arith.cmpi eq, %10, %28 : vector<128x1xi32>
    %30 = arith.extui %29 : vector<128x1xi1> to vector<128x1xi32>
    %31 = arith.sitofp %30 : vector<128x1xi32> to vector<128x1xf32>
    %32 = vector.extract_strided_slice %9 {offsets = [0, 64], sizes = [128, 32], strides = [1, 1]} : vector<128x96xf32> to vector<128x32xf32>
    %33 = vector.broadcast %31 : vector<128x1xf32> to vector<128x32xf32>
    %34 = arith.mulf %33, %32 : vector<128x32xf32>
    %35 = arith.addf %27, %34 : vector<128x32xf32>
    %36 = tpu.iota {dimensions = array<i32: 0>} : vector<16x128xi32>
    %c16_i32 = arith.constant 16 : i32
    %37 = arith.muli %arg0, %c16_i32 : i32
    %38 = vector.broadcast %37 : i32 to vector<16x128xi32>
    %39 = arith.addi %36, %38 : vector<16x128xi32>
    %c0_12 = arith.constant 0 : index
    %c0_13 = arith.constant 0 : index
    %40 = vector.load %arg7[%c0_12, %c0_13] : memref<1x128xi32, #tpu.memory_space<vmem>>, vector<1x128xi32>
    %41 = vector.broadcast %40 : vector<1x128xi32> to vector<16x128xi32>
    %42 = arith.cmpi eq, %39, %41 : vector<16x128xi32>
    %43 = arith.extui %42 : vector<16x128xi1> to vector<16x128xi32>
    %44 = arith.sitofp %43 : vector<16x128xi32> to vector<16x128xf32>
    %45 = arith.truncf %44 : vector<16x128xf32> to vector<16x128xbf16>
    %c0_14 = arith.constant 0 : index
    %c0_15 = arith.constant 0 : index
    %46 = vector.load %arg8[%c0_14, %c0_15] : memref<16x32xf32, #tpu.memory_space<vmem>>, vector<16x32xf32>
    %47 = arith.truncf %35 : vector<128x32xf32> to vector<128x32xbf16>
    %cst_16 = arith.constant dense<0.000000e+00> : vector<16x32xf32>
    %48 = tpu.matmul %45, %47, %cst_16 {dimension_numbers = #tpu.dot_dimension_numbers<[1], [0], [0], [1], [0, 0, 1, 1], [], []>} : vector<16x128xbf16>, vector<128x32xbf16>, vector<16x32xf32> -> vector<16x32xf32>
    %49 = arith.addf %46, %48 : vector<16x32xf32>
    %c0_17 = arith.constant 0 : index
    %c0_18 = arith.constant 0 : index
    %50 = vector.load %arg8[%c0_17, %c0_18] : memref<16x32xf32, #tpu.memory_space<vmem>>, vector<16x32xf32>
    tpu.vector_store %arg8[%c0_17, %c0_18], %49 {strides = array<i32>} : memref<16x32xf32, #tpu.memory_space<vmem>>, vector<16x32xf32>,
    return
  }
  func.func @transform_0(%arg0: i32, %arg1: i32) -> (i32, i32) {
    %c0_i32 = arith.constant 0 : i32
    %c0_i32_0 = arith.constant 0 : i32
    return %arg1, %c0_i32 : i32, i32
  }
  func.func @transform_1(%arg0: i32, %arg1: i32) -> (i32, i32) {
    %c0_i32 = arith.constant 0 : i32
    %c0_i32_0 = arith.constant 0 : i32
    return %arg1, %c0_i32 : i32, i32
  }
  func.func @transform_2(%arg0: i32, %arg1: i32) -> (i32, i32) {
    %c0_i32 = arith.constant 0 : i32
    %c0_i32_0 = arith.constant 0 : i32
    %c0_i32_1 = arith.constant 0 : i32
    return %c0_i32, %c0_i32_0 : i32, i32
  }
  func.func @transform_3(%arg0: i32, %arg1: i32) -> (i32, i32) {
    %c0_i32 = arith.constant 0 : i32
    %c0_i32_0 = arith.constant 0 : i32
    %c0_i32_1 = arith.constant 0 : i32
    return %c0_i32, %c0_i32_0 : i32, i32
  }
  func.func @transform_4(%arg0: i32, %arg1: i32) -> (i32, i32) {
    %c0_i32 = arith.constant 0 : i32
    %c0_i32_0 = arith.constant 0 : i32
    return %arg1, %c0_i32 : i32, i32
  }
  func.func @transform_5(%arg0: i32, %arg1: i32) -> (i32, i32) {
    %c0_i32 = arith.constant 0 : i32
    %c0_i32_0 = arith.constant 0 : i32
    return %c0_i32, %arg1 : i32, i32
  }
  func.func @transform_6(%arg0: i32, %arg1: i32) -> (i32, i32) {
    %c0_i32 = arith.constant 0 : i32
    %c0_i32_0 = arith.constant 0 : i32
    return %arg0, %c0_i32 : i32, i32
  }
}

</mosaic_0001>

<bundles_post_ra>
// kernel: tpu_custom_call.1
= control target key start
LH: loop header
LB: loop body
LE: loop exit
PB: predicated region body
PF: predicated region fallthrough
CT: control target
= control target key end

     0   :  { %11 = vsyncpa [#allocation3], 0  ;;  %s2191_s0 = inlined_call_operand.hbm [shape: bf16[128,32], index: 0, kind: input, shape index: {}]   ;;  %s2192_s1 = inlined_call_operand.hbm [shape: bf16[128,32], index: 1, kind: input, shape index: {}]   ;;  %s2193_s2 = inlined_call_operand.hbm [shape: bf16[32,96], index: 2, kind: input, shape index: {}]   ;;  %s2194_s3 = inlined_call_operand.hbm [shape: bf16[32,96], index: 3, kind: input, shape index: {}]   ;;  %s2195_s4 = inlined_call_operand.hbm [shape: s32[128,1], index: 4, kind: input, shape index: {}]   ;;  %s2196_s5 = inlined_call_operand.hbm [shape: s32[1,128], index: 5, kind: input, shape index: {}]   ;;  %s2197_s6 = inlined_call_operand.hbm [shape: f32[16,32], index: 6, kind: output, shape index: {}]  }
   0x1   :  { %12 = vsyncpa [#allocation6], 0 }
   0x2   :  { %13 = vsyncpa [#allocation9], 0 }
   0x3   :  { %14 = vsyncpa [#allocation12], 0 }
   0x4   :  { %15 = vsyncpa [#allocation4], 0  ;;  %s1733_s21 = smov [#allocation5]   ;;  %s1734_s23 = smov [#allocation8]  }
   0x5   :  { %s33_s22 = sshll.u32 %s1733_s21, 4  ;;  %s57_s24 = sshll.u32 %s1734_s23, 4  ;;  %s34_s22 = int_to_ptr.vmem [resolvable:$true] %s33_s22  ;;  %s1784_s24 = int_to_ptr.vmem [resolvable:$true] %s57_s24 }
   0x6   :  { %s1569_s27 = scalar_lea.hbm %s2192_s1, 1024 }
   0x7   :  { %p1570_p0 = scmp.ne.s32.totalorder %s2192_s1, %s1569_s27  ;;  %p1573_p1 = scmp.lt.u32.totalorder %s1569_s27, %s2192_s1 }
   0x9   :  { %p1575_p2 = pnand %p1573_p1, %p1570_p0 }
   0xb   :  { %1578 = shalt.err (!%p1575_p2)
}
   0xc   :  { %s1579_s8 = scalar_lea.vmem %s34_s22, 1024  ;;  %p1584_p4 = scmp.lt.s32.totalorder %s34_s22, %s34_s22 }
   0xd   :  { %p1580_p3 = scmp.ne.s32.totalorder %s34_s22, %s1579_s8  ;;  %p1585_p5 = scmp.lt.s32.totalorder %s1579_s8, %s1579_s8 }
   0xf   :  { %p1586_p6 = por %p1585_p5, %p1584_p4 }
  0x11   :  { %p1587_p7 = pnand %p1586_p6, %p1580_p3 }
  0x13   :  { %1590 = shalt.err (!%p1587_p7)
}
  0x14   :  { %s1735_s9 = smov 64   ;;  %s1736_s10 = smov 4  }
  0x15   :  { %39 = dma.hbm_to_vmem [thread:$0]  %s2192_s1, 1024, %s34_s22, [#allocation6], %s1735_s9, %s1735_s9, %s1736_s10  }
  0x16   :  { %s1591_s15 = scalar_lea.hbm %s2194_s3, 256 }
  0x17   :  { %p1592_p8 = scmp.ne.s32.totalorder %s2194_s3, %s1591_s15  ;;  %p1595_p9 = scmp.lt.u32.totalorder %s1591_s15, %s2194_s3 }
  0x19   :  { %p1597_p10 = pnand %p1595_p9, %p1592_p8 }
  0x1b   :  { %1600 = shalt.err (!%p1597_p10)
}
  0x1c   :  { %s1601_s20 = scalar_lea.vmem %s1784_s24, 256  ;;  %p1606_p12 = scmp.lt.s32.totalorder %s1784_s24, %s1784_s24 }
  0x1d   :  { %p1602_p11 = scmp.ne.s32.totalorder %s1784_s24, %s1601_s20  ;;  %p1607_p13 = scmp.lt.s32.totalorder %s1601_s20, %s1601_s20 }
  0x1f   :  { %p1608_p0 = por %p1607_p13, %p1606_p12 }
  0x21   :  { %p1609_p1 = pnand %p1608_p0, %p1602_p11 }
  0x23   :  { %1612 = shalt.err (!%p1609_p1)
}
  0x24   :  { %63 = dma.hbm_to_vmem [thread:$0]  %s2194_s3, 256, %s1784_s24, [#allocation9], %s1735_s9, %s1735_s9, %s1736_s10  }
  0x25   :  { %s1737_s22 = smov [#allocation2]   ;;  %s1738_s25 = smov [#allocation7]  }
  0x26   :  { %s21_s23 = sshll.u32 %s1737_s22, 4  ;;  %s45_s26 = sshll.u32 %s1738_s25, 4  ;;  %s22_s23 = int_to_ptr.vmem [resolvable:$true] %s21_s23  ;;  %s1821_s26 = int_to_ptr.vmem [resolvable:$true] %s45_s26 }
  0x27   :  { %s1613_s29 = scalar_lea.hbm %s2191_s0, 1024 }
  0x28   :  { %p1614_p2 = scmp.ne.s32.totalorder %s2191_s0, %s1613_s29  ;;  %p1617_p3 = scmp.lt.u32.totalorder %s1613_s29, %s2191_s0 }
  0x2a   :  { %p1619_p4 = pnand %p1617_p3, %p1614_p2 }
  0x2c   :  { %1622 = shalt.err (!%p1619_p4)
}
  0x2d   :  { %s1623_s3 = scalar_lea.vmem %s22_s23, 1024  ;;  %p1628_p6 = scmp.lt.s32.totalorder %s22_s23, %s22_s23 }
  0x2e   :  { %p1624_p5 = scmp.ne.s32.totalorder %s22_s23, %s1623_s3  ;;  %p1629_p7 = scmp.lt.s32.totalorder %s1623_s3, %s1623_s3 }
  0x30   :  { %p1630_p8 = por %p1629_p7, %p1628_p6 }
  0x32   :  { %p1631_p9 = pnand %p1630_p8, %p1624_p5 }
  0x34   :  { %1634 = shalt.err (!%p1631_p9)
}
  0x35   :  { %27 = dma.hbm_to_vmem [thread:$0]  %s2191_s0, 1024, %s22_s23, [#allocation3], %s1735_s9, %s1735_s9, %s1736_s10  }
  0x36   :  { %s1635_s15 = scalar_lea.hbm %s2193_s2, 256 }
  0x37   :  { %p1636_p10 = scmp.ne.s32.totalorder %s2193_s2, %s1635_s15  ;;  %p1639_p11 = scmp.lt.u32.totalorder %s1635_s15, %s2193_s2 }
  0x39   :  { %p1641_p12 = pnand %p1639_p11, %p1636_p10 }
  0x3b   :  { %1644 = shalt.err (!%p1641_p12)
}
  0x3c   :  { %s1645_s20 = scalar_lea.vmem %s1821_s26, 256  ;;  %p1650_p0 = scmp.lt.s32.totalorder %s1821_s26, %s1821_s26 }
  0x3d   :  { %p1646_p13 = scmp.ne.s32.totalorder %s1821_s26, %s1645_s20  ;;  %p1651_p1 = scmp.lt.s32.totalorder %s1645_s20, %s1645_s20 }
  0x3f   :  { %p1652_p2 = por %p1651_p1, %p1650_p0 }
  0x41   :  { %p1653_p3 = pnand %p1652_p2, %p1646_p13 }
  0x43   :  { %1656 = shalt.err (!%p1653_p3)
}
  0x44   :  { %51 = dma.hbm_to_vmem [thread:$0]  %s2193_s2, 256, %s1821_s26, [#allocation6], %s1735_s9, %s1735_s9, %s1736_s10  }
  0x45   :  { %s1739_s21 = smov [#allocation10]   ;;  %s1657_s27 = scalar_lea.hbm %s2195_s4, 2048 }
  0x46   :  { %s69_s22 = sshll.u32 %s1739_s21, 4  ;;  %p1658_p4 = scmp.ne.s32.totalorder %s2195_s4, %s1657_s27  ;;  %s70_s22 = int_to_ptr.vmem [resolvable:$true] %s69_s22 }
  0x47   :  { %p1661_p5 = scmp.lt.u32.totalorder %s1657_s27, %s2195_s4 }
  0x49   :  { %p1663_p6 = pnand %p1661_p5, %p1658_p4 }
  0x4b   :  { %1666 = shalt.err (!%p1663_p6)
}
  0x4c   :  { %s1667_s8 = scalar_lea.vmem %s70_s22, 2048  ;;  %p1672_p8 = scmp.lt.s32.totalorder %s70_s22, %s70_s22 }
  0x4d   :  { %p1668_p7 = scmp.ne.s32.totalorder %s70_s22, %s1667_s8  ;;  %p1673_p9 = scmp.lt.s32.totalorder %s1667_s8, %s1667_s8 }
  0x4f   :  { %p1674_p10 = por %p1673_p9, %p1672_p8 }
  0x51   :  { %p1675_p11 = pnand %p1674_p10, %p1668_p7 }
  0x53   :  { %1678 = shalt.err (!%p1675_p11)
}
  0x54   :  { %s1740_s2 = smov 128   ;;  %s1741_s10 = smov 8  }
  0x55   :  { %75 = dma.hbm_to_vmem [thread:$0]  %s2195_s4, 2048, %s70_s22, [#allocation9], %s1740_s2, %s1740_s2, %s1741_s10  }
  0x56   :  { %s1742_s3 = smov [#allocation11]   ;;  %s1679_s14 = scalar_lea.hbm %s2196_s5, 16 }
  0x57   :  { %s82_s24 = sshll.u32 %s1742_s3, 4  ;;  %p1680_p12 = scmp.ne.s32.totalorder %s2196_s5, %s1679_s14  ;;  %s83_s24 = int_to_ptr.vmem [resolvable:$true] %s82_s24 }
  0x58   :  { %p1683_p13 = scmp.lt.u32.totalorder %s1679_s14, %s2196_s5 }
  0x5a   :  { %p1685_p0 = pnand %p1683_p13, %p1680_p12 }
  0x5c   :  { %1688 = shalt.err (!%p1685_p0)
}
  0x5d   :  { %s1689_s19 = scalar_lea.vmem %s83_s24, 16  ;;  %s1693_s4 = scalar_lea.vmem %s83_s24, 32 }
  0x5e   :  { %p1690_p1 = scmp.ne.s32.totalorder %s83_s24, %s1689_s19  ;;  %p1694_p2 = scmp.lt.s32.totalorder %s83_s24, %s83_s24 }
  0x5f   :  { %p1695_p3 = scmp.lt.s32.totalorder %s1693_s4, %s1689_s19 }
  0x61   :  { %p1696_p4 = por %p1695_p3, %p1694_p2 }
  0x63   :  { %p1697_p5 = pnand %p1696_p4, %p1690_p1 }
  0x65   :  { %1700 = shalt.err (!%p1697_p5)
}
  0x66   :  { %85 = dma.hbm_to_vmem [thread:$0]  %s2196_s5, 16, %s83_s24, [#allocation12]  }
  0x67   :  { %1723 = dma.done.wait [#allocation3], 1024  }
  0x68   :  { %1724 = vsyncadd [#allocation3], 4294966272 }
  0x69   :  { %1725 = dma.done.wait [#allocation6], 1280  }
  0x6a   :  { %1726 = vsyncadd [#allocation6], 4294966016 }
  0x6b   :  { %1727 = dma.done.wait [#allocation9], 2304  }
  0x6c   :  { %1728 = vsyncadd [#allocation9], 4294964992 }
  0x6d   :  { %1729 = dma.done.wait [#allocation12], 16  }
  0x6e   :  { %1730 = vsyncadd [#allocation12], 4294967280  ;;  %vm109_vm0 = vcmask 261120   ;;  %v1743_v0 = vmov 0   ;;  %v1744_v1 = vmov 0.0   ;;  %v1549_v2 = vld [vmem:[#allocation8] sm:$0xff]  }
  0x6f   :  { %1438 = vset.pattern.permute.xlu1 %v1743_v0  ;;  %1427 = vset.pattern.permute.xlu0 %v1743_v0  ;;  %110 = vst.msk [vmem:[#allocation13] sm:$0xff] %vm109_vm0, %v1744_v1  ;;  %111 = vst.msk [vmem:[#allocation13 + $0x8] sm:$0xff] %vm109_vm0, %v1744_v1  ;;  %v1550_v3 = vld [vmem:[#allocation7] sm:$0xff]   ;;  %v1551_v4 = vld [vmem:[#allocation8 + $0x8] sm:$0xff]   ;;  %s1745_s5 = smov 96  }
  0x70   :  { %1335 = vmatprep.subr.bf16.mxu1 %v1549_v2  ;;  %1355 = vmatprep.subr.bf16.mxu0 %v1550_v3  ;;  %v1552_v5 = vld [vmem:[#allocation7 + $0x8] sm:$0xff]   ;;  %v1553_v6 = vld [vmem:[#allocation5] sm:$0xff]   ;;  %v1557_v10 = vld [vmem:[#allocation5 + $0x10] sm:$0xff]  }
  0x71   :  { %1336 = vmatpush3.bf16.msra.mxu1 %v1549_v2  ;;  %1356 = vmatpush3.bf16.msra.mxu0 %v1550_v3  ;;  %v1554_v7 = vld [vmem:[#allocation2] sm:$0xff]   ;;  %v1555_v8 = vld [vmem:[#allocation5 + $0x8] sm:$0xff]   ;;  %v1558_v11 = vld [vmem:[#allocation2 + $0x10] sm:$0xff]  }
  0x72   :  { %1337 = vmatprep.subr.bf16.mxu1 %v1551_v4  ;;  %1357 = vmatprep.subr.bf16.mxu0 %v1552_v5  ;;  %v1556_v9 = vld [vmem:[#allocation2 + $0x8] sm:$0xff]   ;;  %v1559_v12 = vld [vmem:[#allocation5 + $0x18] sm:$0xff]   ;;  %v1561_v14 = vld [vmem:[#allocation5 + $0x20] sm:$0xff]  }
  0x73   :  { %1339 = vmatprep.mubr.msk.bf16.mxu1 %vm109_vm0, %v1553_v6  ;;  %1359 = vmatprep.mubr.msk.bf16.mxu0 %vm109_vm0, %v1554_v7  ;;  %v1560_v13 = vld [vmem:[#allocation2 + $0x18] sm:$0xff]   ;;  %v1562_v15 = vld [vmem:[#allocation2 + $0x20] sm:$0xff]   ;;  %v1900_v16 = vld [vmem:[#allocation10 + $0x10] sm:$0xff] }
  0x74   :  { %v1902_v17 = vld [vmem:[#allocation10 + $0x18] sm:$0xff]  ;;  %v1904_v18 = vld [vmem:[#allocation10] sm:$0xff]  ;;  %vm677_vm1 = vcmp.eq.s32.totalorder %v1900_v16, 2  ;;  %v1908_v19 = vld [vmem:[#allocation10 + $0x8] sm:$0xff]  ;;  %vm901_vm4 = vcmp.eq.s32.totalorder %v1900_v16, 3 }
  0x75   :  { %1338 = vmatpush3.bf16.msra.mxu1 %v1551_v4  ;;  %1358 = vmatpush3.bf16.msra.mxu0 %v1552_v5  ;;  %vm678_vm2 = vcmp.eq.s32.totalorder %v1902_v17, 2  ;;  %vm675_vm3 = vcmp.eq.s32.totalorder %v1904_v18, 2  ;;  %v1563_v20 = vld [vmem:[#allocation5 + $0x28] sm:$0xff]   ;;  %v1271_v21 = vsel %vm677_vm1, 1.0, %v1744_v1  ;;  %vm676_vm5 = vcmp.eq.s32.totalorder %v1908_v19, 2  ;;  %v1916_v24 = vld [vmem:[#allocation10 + $0x20] sm:$0xff] }
  0x76   :  { %1375 = vmatprep.subr.bf16.mxu1 %v1744_v1  ;;  %v1272_v22 = vsel %vm678_vm2, 1.0, %v1744_v1  ;;  %v1269_v23 = vsel %vm675_vm3, 1.0, %v1744_v1  ;;  %v1564_v25 = vld [vmem:[#allocation2 + $0x28] sm:$0xff]   ;;  %v1565_v26 = vld [vmem:[#allocation5 + $0x30] sm:$0xff]   ;;  %v1270_v28 = vsel %vm676_vm5, 1.0, %v1744_v1  ;;  %vm902_vm6 = vcmp.eq.s32.totalorder %v1902_v17, 3 }
  0x77   :  { %v1439_v27 = vpack.i.bf16 %v1272_v22, %v1271_v21  ;;  %v1287_v29 = vsel %vm901_vm4, 1.0, %v1744_v1  ;;  %v1921_v30 = vld [vmem:[#allocation10 + $0x28] sm:$0xff]  ;;  %v1566_v31 = vld [vmem:[#allocation2 + $0x30] sm:$0xff]   ;;  %v1428_v32 = vpack.i.bf16 %v1270_v28, %v1269_v23  ;;  %v1288_v33 = vsel %vm902_vm6, 1.0, %v1744_v1  ;;  %v1931_v38 = vld [vmem:[#allocation10 + $0x38] sm:$0xff] }
  0x78   :  { %1340 = vmatmul.mubr.msk.bf16.vlgmr.msra.gmra.mrb[0].mxu1 %vm109_vm0, %v1555_v8  ;;  %1360 = vmatmul.mubr.msk.bf16.vlgmr.msra.gmra.mrb[0].mxu0 %vm109_vm0, %v1556_v9  ;;  %vm899_vm7 = vcmp.eq.s32.totalorder %v1904_v18, 3  ;;  %vm900_vm8 = vcmp.eq.s32.totalorder %v1908_v19, 3  ;;  %v1926_v34 = vld [vmem:[#allocation10 + $0x30] sm:$0xff]  ;;  %v1444_v35 = vpack.i.bf16 %v1288_v33, %v1287_v29  ;;  %vm903_vm9 = vcmp.eq.s32.totalorder %v1916_v24, 3  ;;  %v1946_v44 = vld [vmem:[#allocation10 + $0x40] sm:$0xff]  ;;  %v1948_v45 = vld [vmem:[#allocation10 + $0x48] sm:$0xff] }
  0x79   :  { %1343 = vmatprep.mubr.msk.bf16.mxu1 %vm109_vm0, %v1557_v10  ;;  %1363 = vmatprep.mubr.msk.bf16.mxu0 %vm109_vm0, %v1558_v11  ;;  %v1285_v36 = vsel %vm899_vm7, 1.0, %v1744_v1  ;;  %v1286_v37 = vsel %vm900_vm8, 1.0, %v1744_v1  ;;  %vm904_vm10 = vcmp.eq.s32.totalorder %v1921_v30, 3  ;;  %v1289_v40 = vsel %vm903_vm9, 1.0, %v1744_v1  ;;  %v1567_v47 = vld [vmem:[#allocation5 + $0x38] sm:$0xff]   ;;  %v1960_v54 = vld [vmem:[#allocation10 + $0x50] sm:$0xff] }
  0x7a   :  { %1440 = vperm.xlu1 %1438, %v1439_v27   ;;  %1429 = vperm.xlu0 %1427, %v1428_v32   ;;  %v1433_v39 = vpack.i.bf16 %v1286_v37, %v1285_v36  ;;  %vm679_vm11 = vcmp.eq.s32.totalorder %v1916_v24, 2  ;;  %v1290_v41 = vsel %vm904_vm10, 1.0, %v1744_v1  ;;  %vm680_vm12 = vcmp.eq.s32.totalorder %v1921_v30, 2  ;;  %v1568_v51 = vld [vmem:[#allocation2 + $0x38] sm:$0xff]   ;;  %v1974_v62 = vld [vmem:[#allocation10 + $0x60] sm:$0xff]  ;;  %v1976_v63 = vld [vmem:[#allocation10 + $0x68] sm:$0xff] }
  0x7b   :  { %v1273_v42 = vsel %vm679_vm11, 1.0, %v1744_v1  ;;  %vm905_vm13 = vcmp.eq.s32.totalorder %v1926_v34, 3  ;;  %v1274_v43 = vsel %vm680_vm12, 1.0, %v1744_v1  ;;  %vm906_vm14 = vcmp.eq.s32.totalorder %v1931_v38, 3  ;;  %v1962_v55 = vld [vmem:[#allocation10 + $0x58] sm:$0xff]  ;;  %v1986_v7 = vld [vmem:[#allocation10 + $0x70] sm:$0xff] }
  0x7c   :  { %v1454_v46 = vpack.i.bf16 %v1290_v41, %v1289_v40  ;;  %vm681_vm15 = vcmp.eq.s32.totalorder %v1926_v34, 2  ;;  %vm682_vm1 = vcmp.eq.s32.totalorder %v1931_v38, 2  ;;  %v1449_v48 = vpack.i.bf16 %v1274_v43, %v1273_v42  ;;  %v1988_v8 = vld [vmem:[#allocation10 + $0x78] sm:$0xff] }
  0x7d   :  { %v1291_v49 = vsel %vm905_vm13, 1.0, %v1744_v1  ;;  %v1292_v50 = vsel %vm906_vm14, 1.0, %v1744_v1  ;;  %v1275_v52 = vsel %vm681_vm15, 1.0, %v1744_v1  ;;  %v1276_v53 = vsel %vm682_vm1, 1.0, %v1744_v1 }
  0x7e   :  { %1445 = vperm.xlu1 %1438, %v1444_v35   ;;  %1434 = vperm.xlu0 %1427, %v1433_v39   ;;  %vm907_vm2 = vcmp.eq.s32.totalorder %v1946_v44, 3  ;;  %vm908_vm3 = vcmp.eq.s32.totalorder %v1948_v45, 3  ;;  %vm683_vm4 = vcmp.eq.s32.totalorder %v1946_v44, 2  ;;  %vm684_vm5 = vcmp.eq.s32.totalorder %v1948_v45, 2 }
  0x7f   :  { %v1464_v56 = vpack.i.bf16 %v1292_v50, %v1291_v49  ;;  %v1459_v57 = vpack.i.bf16 %v1276_v53, %v1275_v52  ;;  %v1293_v58 = vsel %vm907_vm2, 1.0, %v1744_v1  ;;  %v1294_v59 = vsel %vm908_vm3, 1.0, %v1744_v1 }
  0x80   :  { %1344 = vmatmul.mubr.msk.bf16.gmra.mrb[4].mxu1 %vm109_vm0, %v1559_v12  ;;  %1364 = vmatmul.mubr.msk.bf16.gmra.mrb[4].mxu0 %vm109_vm0, %v1560_v13  ;;  %v1277_v60 = vsel %vm683_vm4, 1.0, %v1744_v1  ;;  %v1278_v61 = vsel %vm684_vm5, 1.0, %v1744_v1  ;;  %vm909_vm6 = vcmp.eq.s32.totalorder %v1960_v54, 3  ;;  %vm910_vm7 = vcmp.eq.s32.totalorder %v1962_v55, 3 }
  0x81   :  { %1347 = vmatprep.mubr.msk.bf16.mxu1 %vm109_vm0, %v1561_v14  ;;  %1367 = vmatprep.mubr.msk.bf16.mxu0 %vm109_vm0, %v1562_v15  ;;  %vm685_vm8 = vcmp.eq.s32.totalorder %v1960_v54, 2  ;;  %vm686_vm9 = vcmp.eq.s32.totalorder %v1962_v55, 2  ;;  %v1474_v0 = vpack.i.bf16 %v1294_v59, %v1293_v58  ;;  %v1469_v2 = vpack.i.bf16 %v1278_v61, %v1277_v60 }
  0x82   :  { %1455 = vperm.xlu1 %1438, %v1454_v46   ;;  %1450 = vperm.xlu0 %1427, %v1449_v48   ;;  %v1295_v3 = vsel %vm909_vm6, 1.0, %v1744_v1  ;;  %v1296_v4 = vsel %vm910_vm7, 1.0, %v1744_v1  ;;  %v1279_v5 = vsel %vm685_vm8, 1.0, %v1744_v1  ;;  %v1280_v6 = vsel %vm686_vm9, 1.0, %v1744_v1 }
  0x83   :  { %vm911_vm10 = vcmp.eq.s32.totalorder %v1974_v62, 3  ;;  %vm912_vm11 = vcmp.eq.s32.totalorder %v1976_v63, 3  ;;  %vm687_vm12 = vcmp.eq.s32.totalorder %v1974_v62, 2  ;;  %vm688_vm13 = vcmp.eq.s32.totalorder %v1976_v63, 2 }
  0x84   :  { %v1484_v9 = vpack.i.bf16 %v1296_v4, %v1295_v3  ;;  %v1479_v10 = vpack.i.bf16 %v1280_v6, %v1279_v5  ;;  %v1297_v11 = vsel %vm911_vm10, 1.0, %v1744_v1  ;;  %v1298_v12 = vsel %vm912_vm11, 1.0, %v1744_v1 }
  0x85   :  { %v1281_v13 = vsel %vm687_vm12, 1.0, %v1744_v1  ;;  %v1282_v14 = vsel %vm688_vm13, 1.0, %v1744_v1  ;;  %vm913_vm14 = vcmp.eq.s32.totalorder %v1986_v7, 3  ;;  %vm914_vm15 = vcmp.eq.s32.totalorder %v1988_v8, 3 }
  0x86   :  { %1465 = vperm.xlu1 %1438, %v1464_v56   ;;  %1460 = vperm.xlu0 %1427, %v1459_v57   ;;  %vm689_vm1 = vcmp.eq.s32.totalorder %v1986_v7, 2  ;;  %vm690_vm2 = vcmp.eq.s32.totalorder %v1988_v8, 2  ;;  %v1494_v15 = vpack.i.bf16 %v1298_v12, %v1297_v11  ;;  %v1299_v21 = vsel %vm913_vm14, 1.0, %v1744_v1 }
  0x87   :  { %v1300_v22 = vsel %vm914_vm15, 1.0, %v1744_v1  ;;  %v1283_v23 = vsel %vm689_vm1, 1.0, %v1744_v1  ;;  %vm517_vm3 = vcmp.eq.s32.totalorder %v1900_v16, 1  ;;  %vm518_vm4 = vcmp.eq.s32.totalorder %v1902_v17, 1 }
  0x88   :  { %1348 = vmatmul.mubr.msk.bf16.gmra.mrb[8].mxu1 %vm109_vm0, %v1563_v20  ;;  %1368 = vmatmul.mubr.msk.bf16.gmra.mrb[8].mxu0 %vm109_vm0, %v1564_v25  ;;  %v1489_v20 = vpack.i.bf16 %v1282_v14, %v1281_v13  ;;  %v1284_v25 = vsel %vm690_vm2, 1.0, %v1744_v1  ;;  %vm515_vm5 = vcmp.eq.s32.totalorder %v1904_v18, 1  ;;  %vm516_vm6 = vcmp.eq.s32.totalorder %v1908_v19, 1 }
  0x89   :  { %1351 = vmatprep.mubr.msk.bf16.mxu1 %vm109_vm0, %v1565_v26  ;;  %1371 = vmatprep.mubr.msk.bf16.mxu0 %vm109_vm0, %v1566_v31  ;;  %v1504_v26 = vpack.i.bf16 %v1300_v22, %v1299_v21  ;;  %v1499_v27 = vpack.i.bf16 %v1284_v25, %v1283_v23  ;;  %v1255_v28 = vsel %vm517_vm3, 1.0, %v1744_v1  ;;  %v1256_v29 = vsel %vm518_vm4, 1.0, %v1744_v1 }
  0x8a   :  { %1475 = vperm.xlu1 %1438, %v1474_v0   ;;  %1470 = vperm.xlu0 %1427, %v1469_v2   ;;  %v1253_v31 = vsel %vm515_vm5, 1.0, %v1744_v1  ;;  %v1254_v32 = vsel %vm516_vm6, 1.0, %v1744_v1  ;;  %vm521_vm7 = vcmp.eq.s32.totalorder %v1926_v34, 1  ;;  %vm522_vm8 = vcmp.eq.s32.totalorder %v1931_v38, 1 }
  0x8b   :  { %vm519_vm9 = vcmp.eq.s32.totalorder %v1916_v24, 1  ;;  %vm520_vm10 = vcmp.eq.s32.totalorder %v1921_v30, 1  ;;  %v1514_v16 = vpack.i.bf16 %v1256_v29, %v1255_v28  ;;  %v1509_v17 = vpack.i.bf16 %v1254_v32, %v1253_v31 }
  0x8c   :  { %v1259_v18 = vsel %vm521_vm7, 1.0, %v1744_v1  ;;  %v1260_v19 = vsel %vm522_vm8, 1.0, %v1744_v1  ;;  %v1257_v33 = vsel %vm519_vm9, 1.0, %v1744_v1  ;;  %v1258_v35 = vsel %vm520_vm10, 1.0, %v1744_v1 }
  0x8d   :  { %vm525_vm11 = vcmp.eq.s32.totalorder %v1960_v54, 1  ;;  %vm526_vm12 = vcmp.eq.s32.totalorder %v1962_v55, 1  ;;  %vm523_vm13 = vcmp.eq.s32.totalorder %v1946_v44, 1  ;;  %vm524_vm14 = vcmp.eq.s32.totalorder %v1948_v45, 1 }
  0x8e   :  { %1485 = vperm.xlu1 %1438, %v1484_v9   ;;  %1480 = vperm.xlu0 %1427, %v1479_v10   ;;  %v1524_v24 = vpack.i.bf16 %v1260_v19, %v1259_v18  ;;  %v1519_v30 = vpack.i.bf16 %v1258_v35, %v1257_v33  ;;  %v1263_v34 = vsel %vm525_vm11, 1.0, %v1744_v1  ;;  %v1264_v36 = vsel %vm526_vm12, 1.0, %v1744_v1 }
  0x8f   :  { %v1261_v37 = vsel %vm523_vm13, 1.0, %v1744_v1  ;;  %v1262_v38 = vsel %vm524_vm14, 1.0, %v1744_v1  ;;  %vm529_vm15 = vcmp.eq.s32.totalorder %v1986_v7, 1  ;;  %vm530_vm1 = vcmp.eq.s32.totalorder %v1988_v8, 1 }
  0x90   :  { %1352 = vmatmul.mubr.msk.bf16.gmra.mrb[12].mxu1 %vm109_vm0, %v1567_v47  ;;  %1372 = vmatmul.mubr.msk.bf16.gmra.mrb[12].mxu0 %vm109_vm0, %v1568_v51  ;;  %vm527_vm2 = vcmp.eq.s32.totalorder %v1974_v62, 1  ;;  %vm528_vm3 = vcmp.eq.s32.totalorder %v1976_v63, 1  ;;  %v1534_v39 = vpack.i.bf16 %v1264_v36, %v1263_v34  ;;  %v1529_v40 = vpack.i.bf16 %v1262_v38, %v1261_v37 }
  0x91   :  { %v1267_v41 = vsel %vm529_vm15, 1.0, %v1744_v1  ;;  %v1268_v42 = vsel %vm530_vm1, 1.0, %v1744_v1  ;;  %v1265_v43 = vsel %vm527_vm2, 1.0, %v1744_v1  ;;  %v1266_v44 = vsel %vm528_vm3, 1.0, %v1744_v1 }
  0x92   :  { %1495 = vperm.xlu1 %1438, %v1494_v15   ;;  %1490 = vperm.xlu0 %1427, %v1489_v20   ;;  %v1544_v45 = vpack.i.bf16 %v1268_v42, %v1267_v41  ;;  %v1539_v46 = vpack.i.bf16 %v1266_v44, %v1265_v43  ;;  %vm1746_vm4 = vmmov 0  }
  0x93   :  { %1391 = vmatprep.mubr.msk.bf16.mxu1 %vm1746_vm4, %v1744_v1 }
  0x96   :  { %1505 = vperm.xlu1 %1438, %v1504_v26   ;;  %1500 = vperm.xlu0 %1427, %v1499_v27  }
  0x9a   :  { %1515 = vperm.xlu1 %1438, %v1514_v16   ;;  %1510 = vperm.xlu0 %1427, %v1509_v17  }
  0x9e   :  { %1525 = vperm.xlu1 %1438, %v1524_v24   ;;  %1520 = vperm.xlu0 %1427, %v1519_v30  }
  0xa2   :  { %1535 = vperm.xlu1 %1438, %v1534_v39   ;;  %1530 = vperm.xlu0 %1427, %v1529_v40  }
  0xa6   :  { %1545 = vperm.xlu1 %1438, %v1544_v45   ;;  %1540 = vperm.xlu0 %1427, %v1539_v46  }
  0xf9   :  { %v1441_v47 = vpop.permute.xlu1 %1440  ;;  %v1430_v48 = vpop.permute.xlu0 %1429 }
  0xfa   :  { %v1442_v50 = vunpack.i.l.bf16 %v1441_v47  ;;  %v1431_v53 = vunpack.i.l.bf16 %v1430_v48  ;;  %v1443_v9 = vunpack.i.h.bf16 %v1441_v47  ;;  %v1432_v13 = vunpack.i.h.bf16 %v1430_v48 }
  0xfd   :  { %v1446_v49 = vpop.permute.xlu1 %1445  ;;  %v1435_v51 = vpop.permute.xlu0 %1434 }
  0xfe   :  { %v1447_v62 = vunpack.i.l.bf16 %v1446_v49  ;;  %v1436_v3 = vunpack.i.l.bf16 %v1435_v51  ;;  %v1448_v28 = vunpack.i.h.bf16 %v1446_v49  ;;  %v1437_v32 = vunpack.i.h.bf16 %v1435_v51 }
 0x101   :  { %v2046_v6 = vpop.permute.xlu0 %1450  ;;  %v1456_v16 = vpop.permute.xlu1 %1455 }
 0x102   :  { %v1452_v38 = vunpack.i.l.bf16 %v2046_v6  ;;  %v1457_v49 = vunpack.i.l.bf16 %v1456_v16 }
 0x105   :  { %v1461_v17 = vpop.permute.xlu0 %1460  ;;  %v1466_v45 = vpop.permute.xlu1 %1465 }
 0x106   :  { %v1462_v30 = vunpack.i.l.bf16 %v1461_v17  ;;  %v1467_v48 = vunpack.i.l.bf16 %v1466_v45 }
 0x14b   :  { %v1341_v52 = vpop.f32.mrb[0].mxu1  ;;  %v1361_v54 = vpop.f32.mrb[0].mxu0 }
 0x14c   :  { %v263_v55 = vpop.f32.mrb[1].mxu1  ;;  %v2034_v56 = vadd.f32 %v1361_v54, %v1341_v52  ;;  %v436_v57 = vpop.f32.mrb[1].mxu0 }
 0x14d   :  { %v1342_v58 = vpop.f32.mrb[2].mxu1  ;;  %v2036_v59 = vadd.f32 %v436_v57, %v263_v55  ;;  %v1362_v60 = vpop.f32.mrb[2].mxu0  ;;  %v1453_v57 = vunpack.i.h.bf16 %v2046_v6 }
 0x14e   :  { %v266_v61 = vpop.f32.mrb[3].mxu1  ;;  %v2038_v63 = vadd.f32 %v1362_v60, %v1342_v58  ;;  %v439_v0 = vpop.f32.mrb[3].mxu0  ;;  %v805_v2 = vmul.f32 %v1442_v50, %v2034_v56  ;;  %v1029_v8 = vmul.f32 %v1447_v62, %v2034_v56  ;;  %v1463_v62 = vunpack.i.h.bf16 %v1461_v17 }
 0x14f   :  { %v2041_v4 = vadd.f32 %v439_v0, %v266_v61  ;;  %v803_v5 = vmul.f32 %v1431_v53, %v2036_v59  ;;  %v1027_v12 = vmul.f32 %v1436_v3, %v2036_v59  ;;  %v1471_v50 = vpop.permute.xlu0 %1470 }
 0x150   :  { %839 = vrot.lane.b32.xlu0 %v805_v2, %s1745_s5  ;;  %v806_v31 = vmul.f32 %v1443_v9, %v2038_v63  ;;  %v1030_v24 = vmul.f32 %v1448_v28, %v2038_v63 }
 0x151   :  { %835 = vrot.lane.b32.xlu1 %v803_v5, %s1745_s5  ;;  %v804_v27 = vmul.f32 %v1432_v13, %v2041_v4  ;;  %v1028_v19 = vmul.f32 %v1437_v32, %v2041_v4 }
 0x153   :  { %v1345_v7 = vpop.f32.mrb[4].mxu1  ;;  %v1365_v10 = vpop.f32.mrb[4].mxu0 }
 0x154   :  { %v279_v11 = vpop.f32.mrb[5].mxu1  ;;  %v2050_v14 = vadd.f32 %v1365_v10, %v1345_v7  ;;  %1063 = vrot.lane.b32.xlu0 %v1029_v8, %s1735_s9  ;;  %v452_v15 = vpop.f32.mrb[5].mxu0  ;;  %v1458_v10 = vunpack.i.h.bf16 %v1456_v16 }
 0x155   :  { %v1346_v20 = vpop.f32.mrb[6].mxu1  ;;  %v2053_v21 = vadd.f32 %v452_v15, %v279_v11  ;;  %v1366_v22 = vpop.f32.mrb[6].mxu0  ;;  %1059 = vrot.lane.b32.xlu1 %v1027_v12, %s1735_s9  ;;  %v1468_v11 = vunpack.i.h.bf16 %v1466_v45 }
 0x156   :  { %v282_v23 = vpop.f32.mrb[7].mxu1  ;;  %v2056_v25 = vadd.f32 %v1366_v22, %v1346_v20  ;;  %v455_v26 = vpop.f32.mrb[7].mxu0  ;;  %v809_v44 = vmul.f32 %v1462_v30, %v2050_v14  ;;  %v1033_v52 = vmul.f32 %v1467_v48, %v2050_v14 }
 0x157   :  { %v2059_v29 = vadd.f32 %v455_v26, %v282_v23  ;;  %v807_v47 = vmul.f32 %v1452_v38, %v2053_v21  ;;  %v1031_v55 = vmul.f32 %v1457_v49, %v2053_v21  ;;  %v1476_v12 = vpop.permute.xlu1 %1475  ;;  %v1481_v15 = vpop.permute.xlu0 %1480  ;;  %v1472_v23 = vunpack.i.l.bf16 %v1471_v50 }
 0x158   :  { %837 = vrot.lane.b32.xlu0 %v804_v27, %s1745_s5  ;;  %v810_v6 = vmul.f32 %v1463_v62, %v2056_v25  ;;  %v1034_v20 = vmul.f32 %v1468_v11, %v2056_v25  ;;  %v1482_v22 = vunpack.i.l.bf16 %v1481_v15  ;;  %v1477_v32 = vunpack.i.l.bf16 %v1476_v12 }
 0x159   :  { %841 = vrot.lane.b32.xlu1 %v806_v31, %s1745_s5  ;;  %v808_v8 = vmul.f32 %v1453_v57, %v2059_v29  ;;  %v1032_v13 = vmul.f32 %v1458_v10, %v2059_v29  ;;  %v1478_v30 = vunpack.i.h.bf16 %v1476_v12 }
 0x15b   :  { %v1349_v18 = vpop.f32.mrb[8].mxu1  ;;  %v1369_v33 = vpop.f32.mrb[8].mxu0 }
 0x15c   :  { %v295_v35 = vpop.f32.mrb[9].mxu1  ;;  %v2066_v34 = vadd.f32 %v1369_v33, %v1349_v18  ;;  %v468_v36 = vpop.f32.mrb[9].mxu0  ;;  %1061 = vrot.lane.b32.xlu0 %v1028_v19, %s1735_s9  ;;  %v1473_v18 = vunpack.i.h.bf16 %v1471_v50  ;;  %v1483_v19 = vunpack.i.h.bf16 %v1481_v15 }
 0x15d   :  { %v1350_v37 = vpop.f32.mrb[10].mxu1  ;;  %v2070_v39 = vadd.f32 %v468_v36, %v295_v35  ;;  %v1370_v40 = vpop.f32.mrb[10].mxu0  ;;  %1065 = vrot.lane.b32.xlu1 %v1030_v24, %s1735_s9 }
 0x15e   :  { %v298_v41 = vpop.f32.mrb[11].mxu1  ;;  %v2073_v42 = vadd.f32 %v1370_v40, %v1350_v37  ;;  %v471_v43 = vpop.f32.mrb[11].mxu0  ;;  %v813_v26 = vmul.f32 %v1482_v22, %v2066_v34 }
 0x15f   :  { %v2076_v46 = vadd.f32 %v471_v43, %v298_v41  ;;  %v1486_v27 = vpop.permute.xlu1 %1485  ;;  %v811_v28 = vmul.f32 %v1472_v23, %v2070_v39  ;;  %v1035_v17 = vmul.f32 %v1477_v32, %v2070_v39  ;;  %v1491_v33 = vpop.permute.xlu0 %1490 }
 0x160   :  { %847 = vrot.lane.b32.xlu0 %v809_v44, %s1745_s5  ;;  %v1487_v31 = vunpack.i.l.bf16 %v1486_v27  ;;  %v814_v24 = vmul.f32 %v1483_v19, %v2073_v42  ;;  %v1488_v36 = vunpack.i.h.bf16 %v1486_v27  ;;  %v1493_v49 = vunpack.i.h.bf16 %v1491_v33 }
 0x161   :  { %843 = vrot.lane.b32.xlu1 %v807_v47, %s1745_s5  ;;  %v812_v35 = vmul.f32 %v1473_v18, %v2076_v46  ;;  %v1036_v37 = vmul.f32 %v1478_v30, %v2076_v46  ;;  %v1492_v47 = vunpack.i.l.bf16 %v1491_v33 }
 0x162   :  { %v1037_v16 = vmul.f32 %v1487_v31, %v2066_v34  ;;  %v1038_v40 = vmul.f32 %v1488_v36, %v2073_v42 }
 0x163   :  { %v1353_v51 = vpop.f32.mrb[12].mxu1  ;;  %v1373_v53 = vpop.f32.mrb[12].mxu0 }
 0x164   :  { %v311_v54 = vpop.f32.mrb[13].mxu1  ;;  %v2084_v58 = vadd.f32 %v1373_v53, %v1353_v51  ;;  %v484_v60 = vpop.f32.mrb[13].mxu0  ;;  %1071 = vrot.lane.b32.xlu0 %v1033_v52, %s1735_s9 }
 0x165   :  { %v1354_v61 = vpop.f32.mrb[14].mxu1  ;;  %v2087_v0 = vadd.f32 %v484_v60, %v311_v54  ;;  %v1374_v2 = vpop.f32.mrb[14].mxu0  ;;  %1067 = vrot.lane.b32.xlu1 %v1031_v55, %s1735_s9 }
 0x166   :  { %v314_v3 = vpop.f32.mrb[15].mxu1  ;;  %v2090_v5 = vadd.f32 %v1374_v2, %v1354_v61  ;;  %v487_v7 = vpop.f32.mrb[15].mxu0 }
 0x167   :  { %v2093_v9 = vadd.f32 %v487_v7, %v314_v3  ;;  %v1501_v38 = vpop.permute.xlu0 %1500  ;;  %v1496_v48 = vpop.permute.xlu1 %1495  ;;  %v815_v50 = vmul.f32 %v1492_v47, %v2087_v0 }
 0x168   :  { %845 = vrot.lane.b32.xlu0 %v808_v8, %s1745_s5  ;;  %v1502_v41 = vunpack.i.l.bf16 %v1501_v38  ;;  %v1503_v43 = vunpack.i.h.bf16 %v1501_v38  ;;  %v1497_v52 = vunpack.i.l.bf16 %v1496_v48  ;;  %v1498_v53 = vunpack.i.h.bf16 %v1496_v48 }
 0x169   :  { %849 = vrot.lane.b32.xlu1 %v810_v6, %s1745_s5  ;;  %v816_v51 = vmul.f32 %v1493_v49, %v2093_v9 }
 0x16a   :  { %v817_v44 = vmul.f32 %v1502_v41, %v2084_v58  ;;  %v818_v45 = vmul.f32 %v1503_v43, %v2090_v5  ;;  %v1039_v54 = vmul.f32 %v1497_v52, %v2087_v0  ;;  %v1040_v57 = vmul.f32 %v1498_v53, %v2093_v9 }
 0x16b   :  { %v1506_v55 = vpop.permute.xlu1 %1505  ;;  %v1511_v3 = vpop.permute.xlu0 %1510 }
 0x16c   :  { %1069 = vrot.lane.b32.xlu0 %v1032_v13, %s1735_s9  ;;  %v1507_v60 = vunpack.i.l.bf16 %v1506_v55  ;;  %v1508_v61 = vunpack.i.h.bf16 %v1506_v55  ;;  %v1512_v23 = vunpack.i.l.bf16 %v1511_v3  ;;  %v1513_v31 = vunpack.i.h.bf16 %v1511_v3 }
 0x16d   :  { %1073 = vrot.lane.b32.xlu1 %v1034_v20, %s1735_s9 }
 0x16e   :  { %v1041_v62 = vmul.f32 %v1507_v60, %v2084_v58  ;;  %v1042_v2 = vmul.f32 %v1508_v61, %v2090_v5 }
 0x16f   :  { %v1516_v7 = vpop.permute.xlu1 %1515  ;;  %v1521_v8 = vpop.permute.xlu0 %1520 }
 0x170   :  { %855 = vrot.lane.b32.xlu0 %v813_v26, %s1745_s5  ;;  %v1518_v27 = vunpack.i.h.bf16 %v1516_v7  ;;  %v1522_v49 = vunpack.i.l.bf16 %v1521_v8 }
 0x171   :  { %851 = vrot.lane.b32.xlu1 %v811_v28, %s1745_s5  ;;  %v1517_v28 = vunpack.i.l.bf16 %v1516_v7 }
 0x172   :  { %v646_v33 = vmul.f32 %v1518_v27, %v2038_v63  ;;  %v1523_v63 = vunpack.i.h.bf16 %v1521_v8  ;;  %v647_v53 = vmul.f32 %v1522_v49, %v2053_v21 }
 0x173   :  { %v1526_v6 = vpop.permute.xlu1 %1525  ;;  %v2135_v10 = vpop.permute.xlu0 %1530  ;;  %v645_v19 = vmul.f32 %v1517_v28, %v2034_v56 }
 0x174   :  { %1079 = vrot.lane.b32.xlu0 %v1037_v16, %s1735_s9  ;;  %v643_v16 = vmul.f32 %v1512_v23, %v2036_v59  ;;  %v1532_v28 = vunpack.i.l.bf16 %v2135_v10 }
 0x175   :  { %1075 = vrot.lane.b32.xlu1 %v1035_v17, %s1735_s9  ;;  %v644_v17 = vmul.f32 %v1513_v31, %v2041_v4 }
 0x177   :  { %v2137_v11 = vpop.permute.xlu1 %1535  ;;  %v2139_v12 = vpop.permute.xlu0 %1540 }
 0x178   :  { %853 = vrot.lane.b32.xlu0 %v812_v35, %s1745_s5  ;;  %v1538_v31 = vunpack.i.h.bf16 %v2137_v11 }
 0x179   :  { %857 = vrot.lane.b32.xlu1 %v814_v24, %s1745_s5 }
 0x17b   :  { %v2141_v13 = vpop.permute.xlu1 %1545 }
 0x17c   :  { %1077 = vrot.lane.b32.xlu0 %v1036_v37, %s1735_s9 }
 0x17d   :  { %1081 = vrot.lane.b32.xlu1 %v1038_v40, %s1735_s9 }
 0x180   :  { %863 = vrot.lane.b32.xlu0 %v817_v44, %s1745_s5 }
 0x181   :  { %865 = vrot.lane.b32.xlu1 %v818_v45, %s1745_s5 }
 0x184   :  { %859 = vrot.lane.b32.xlu0 %v815_v50, %s1745_s5  ;;  %v1528_v50 = vunpack.i.h.bf16 %v1526_v6 }
 0x185   :  { %861 = vrot.lane.b32.xlu1 %v816_v51, %s1745_s5  ;;  %v1527_v51 = vunpack.i.l.bf16 %v1526_v6 }
 0x186   :  { %v650_v60 = vmul.f32 %v1528_v50, %v2056_v25  ;;  %v1533_v25 = vunpack.i.h.bf16 %v2135_v10 }
 0x188   :  { %1083 = vrot.lane.b32.xlu0 %v1039_v54, %s1735_s9  ;;  %v648_v54 = vmul.f32 %v1523_v63, %v2059_v29  ;;  %v1547_v63 = vunpack.i.l.bf16 %v2141_v13 }
 0x189   :  { %1085 = vrot.lane.b32.xlu1 %v1040_v57, %s1735_s9  ;;  %v649_v57 = vmul.f32 %v1527_v51, %v2050_v14  ;;  %v1548_v51 = vunpack.i.h.bf16 %v2141_v13  ;;  %v1747_v13 = vmov 1.0|1.0  }
 0x18c   :  { %1087 = vrot.lane.b32.xlu0 %v1041_v62, %s1735_s9 }
 0x18d   :  { %1089 = vrot.lane.b32.xlu1 %v1042_v2, %s1735_s9  ;;  %s1748_s9 = smov [#allocation13]  }
 0x18e   :  { %s1202_s1 = sshll.u32 %s1748_s9, 4  ;;  %s1203_s1 = int_to_ptr.vmem [resolvable:$true] %s1202_s1 }
 0x18f   :  { %s1701_s21 = scalar_lea.vmem %s1203_s1, 256  ;;  %p1706_p7 = scmp.lt.s32.totalorder %s1203_s1, %s1203_s1 }
 0x190   :  { %p1702_p6 = scmp.ne.s32.totalorder %s1203_s1, %s1701_s21  ;;  %p1707_p8 = scmp.lt.s32.totalorder %s1701_s21, %s1701_s21 }
 0x192   :  { %p1708_p9 = por %p1707_p8, %p1706_p7 }
 0x194   :  { %p1709_p10 = pnand %p1708_p9, %p1702_p6 }
 0x1c2   :  { %v840_v15 = vpop.permute.xlu0 %839 }
 0x1c3   :  { %v836_v20 = vpop.permute.xlu1 %835  ;;  %v885_v30 = vadd.f32 %v840_v15, %v645_v19 }
 0x1c4   :  { %v883_v35 = vadd.f32 %v836_v20, %v643_v16 }
 0x1c6   :  { %v1064_v22 = vpop.permute.xlu0 %1063 }
 0x1c7   :  { %v1060_v26 = vpop.permute.xlu1 %1059  ;;  %v1109_v43 = vadd.f32 %v1064_v22, %v885_v30 }
 0x1c8   :  { %v1107_v38 = vadd.f32 %v1060_v26, %v883_v35  ;;  %v654_v35 = vmul.f32 %v1538_v31, %v2073_v42  ;;  %v1123_v42 = vlaneseq }
 0x1ca   :  { %v838_v32 = vpop.permute.xlu0 %837  ;;  %v1124_v50 = vshrl.u32 %v1123_v42, 7 }
 0x1cb   :  { %v842_v18 = vpop.permute.xlu1 %841  ;;  %v884_v24 = vadd.f32 %v838_v32, %v644_v17  ;;  %v1537_v32 = vunpack.i.l.bf16 %v2137_v11  ;;  %v651_v17 = vmul.f32 %v1532_v28, %v2070_v39 }
 0x1cc   :  { %v886_v36 = vadd.f32 %v842_v18, %v646_v33  ;;  %v652_v18 = vmul.f32 %v1533_v25, %v2076_v46  ;;  %v1543_v46 = vunpack.i.h.bf16 %v2139_v12 }
 0x1cd   :  { %v653_v33 = vmul.f32 %v1537_v32, %v2066_v34  ;;  %v1542_v34 = vunpack.i.l.bf16 %v2139_v12 }
 0x1ce   :  { %v1062_v37 = vpop.permute.xlu0 %1061 }
 0x1cf   :  { %v1108_v40 = vadd.f32 %v1062_v37, %v884_v24  ;;  %v1066_v41 = vpop.permute.xlu1 %1065 }
 0x1d0   :  { %v1110_v44 = vadd.f32 %v1066_v41, %v886_v36 }
 0x1d1   :  { %v1144_v45 = vpack.c.bf16 %v1108_v40, %v1107_v38 }
 0x1d2   :  { %v1145_v47 = vpack.c.bf16 %v1110_v44, %v1109_v43  ;;  %v848_v59 = vpop.permute.xlu0 %847 }
 0x1d3   :  { %v844_v48 = vpop.permute.xlu1 %843  ;;  %1376 = vmatpush3.bf16.msra.mxu1 %v1144_v45  ;;  %v889_v2 = vadd.f32 %v848_v59, %v649_v57 }
 0x1d4   :  { %1377 = vmatprep.subr.bf16.mxu1 %v1744_v1  ;;  %v887_v61 = vadd.f32 %v844_v48, %v647_v53  ;;  %v655_v48 = vmul.f32 %v1542_v34, %v2087_v0  ;;  %v658_v0 = vmul.f32 %v1548_v51, %v2090_v5  ;;  %v1142_v5 = vld [vmem:[#allocation13] sm:$0xff] }
 0x1d6   :  { %v1072_v56 = vpop.permute.xlu0 %1071 }
 0x1d7   :  { %v1068_v4 = vpop.permute.xlu1 %1067  ;;  %1378 = vmatpush3.bf16.msra.mxu1 %v1145_v47  ;;  %v1113_v22 = vadd.f32 %v1072_v56, %v889_v2 }
 0x1d8   :  { %1379 = vmatprep.subr.bf16.mxu1 %v1744_v1  ;;  %v1111_v15 = vadd.f32 %v1068_v4, %v887_v61  ;;  %v656_v4 = vmul.f32 %v1543_v46, %v2093_v9  ;;  %v1125_v61 = vadd.s32 8, %v1124_v50 }
 0x1da   :  { %v846_v52 = vpop.permute.xlu0 %845 }
 0x1db   :  { %v850_v55 = vpop.permute.xlu1 %849  ;;  %v888_v62 = vadd.f32 %v846_v52, %v648_v54  ;;  %v657_v54 = vmul.f32 %v1547_v63, %v2084_v58 }
 0x1dc   :  { %v890_v3 = vadd.f32 %v850_v55, %v650_v60 }
 0x1de   :  { %v1070_v7 = vpop.permute.xlu0 %1069 }
 0x1df   :  { %v1112_v20 = vadd.f32 %v1070_v7, %v888_v62  ;;  %v1074_v8 = vpop.permute.xlu1 %1073 }
 0x1e0   :  { %v1114_v6 = vadd.f32 %v1074_v8, %v890_v3  ;;  %v1301_v3 = vld [vmem:[#allocation11] ss:$0 sm:$0xff] }
 0x1e1   :  { %v1146_v23 = vpack.c.bf16 %v1112_v20, %v1111_v15  ;;  %vm1135_vm5 = vcmp.eq.s32.totalorder %v1124_v50, %v1301_v3  ;;  %vm1136_vm6 = vcmp.eq.s32.totalorder %v1125_v61, %v1301_v3 }
 0x1e2   :  { %v1147_v26 = vpack.c.bf16 %v1114_v6, %v1113_v22  ;;  %v856_v21 = vpop.permute.xlu0 %855  ;;  %vm1304_vm7 = vmpackc.low %vm1136_vm6, %vm1135_vm5  ;;  %v1143_v22 = vld [vmem:[#allocation13 + $0x8] sm:$0xff] }
 0x1e3   :  { %v852_v27 = vpop.permute.xlu1 %851  ;;  %1380 = vmatpush3.bf16.msra.mxu1 %v1146_v23  ;;  %v893_v36 = vadd.f32 %v856_v21, %v653_v33 }
 0x1e4   :  { %1381 = vmatprep.subr.bf16.mxu1 %v1744_v1  ;;  %v891_v24 = vadd.f32 %v852_v27, %v651_v17 }
 0x1e6   :  { %v1080_v14 = vpop.permute.xlu0 %1079 }
 0x1e7   :  { %v1076_v29 = vpop.permute.xlu1 %1075  ;;  %1382 = vmatpush3.bf16.msra.mxu1 %v1147_v26  ;;  %v1117_v43 = vadd.f32 %v1080_v14, %v893_v36 }
 0x1e8   :  { %1383 = vmatprep.subr.bf16.mxu1 %v1744_v1  ;;  %v1115_v10 = vadd.f32 %v1076_v29, %v891_v24 }
 0x1ea   :  { %v854_v16 = vpop.permute.xlu0 %853 }
 0x1eb   :  { %v858_v19 = vpop.permute.xlu1 %857  ;;  %v892_v30 = vadd.f32 %v854_v16, %v652_v18 }
 0x1ec   :  { %v894_v37 = vadd.f32 %v858_v19, %v654_v35 }
 0x1ee   :  { %v1078_v38 = vpop.permute.xlu0 %1077 }
 0x1ef   :  { %v1116_v40 = vadd.f32 %v1078_v38, %v892_v30  ;;  %v1082_v41 = vpop.permute.xlu1 %1081 }
 0x1f0   :  { %v1118_v11 = vadd.f32 %v1082_v41, %v894_v37 }
 0x1f1   :  { %v1148_v44 = vpack.c.bf16 %v1116_v40, %v1115_v10 }
 0x1f2   :  { %v1149_v45 = vpack.c.bf16 %v1118_v11, %v1117_v43  ;;  %v864_v39 = vpop.permute.xlu0 %863 }
 0x1f3   :  { %v866_v47 = vpop.permute.xlu1 %865  ;;  %1384 = vmatpush3.bf16.msra.mxu1 %v1148_v44  ;;  %v897_v60 = vadd.f32 %v864_v39, %v657_v54 }
 0x1f4   :  { %1385 = vmatprep.subr.bf16.mxu1 %v1744_v1  ;;  %v898_v9 = vadd.f32 %v866_v47, %v658_v0 }
 0x1f6   :  { %v860_v59 = vpop.permute.xlu0 %859 }
 0x1f7   :  { %v862_v56 = vpop.permute.xlu1 %861  ;;  %1386 = vmatpush3.bf16.msra.mxu1 %v1149_v45  ;;  %v895_v49 = vadd.f32 %v860_v59, %v655_v48 }
 0x1f8   :  { %1387 = vmatprep.subr.bf16.mxu1 %v1744_v1  ;;  %v896_v52 = vadd.f32 %v862_v56, %v656_v4 }
 0x1fa   :  { %v1084_v53 = vpop.permute.xlu0 %1083 }
 0x1fb   :  { %v1119_v12 = vadd.f32 %v1084_v53, %v895_v49  ;;  %v1086_v55 = vpop.permute.xlu1 %1085 }
 0x1fc   :  { %v1120_v57 = vadd.f32 %v1086_v55, %v896_v52 }
 0x1fe   :  { %v1150_v62 = vpack.c.bf16 %v1120_v57, %v1119_v12  ;;  %v1088_v2 = vpop.permute.xlu0 %1087 }
 0x1ff   :  { %v1121_v7 = vadd.f32 %v1088_v2, %v897_v60  ;;  %v1090_v15 = vpop.permute.xlu1 %1089 }
 0x200   :  { %v1122_v20 = vadd.f32 %v1090_v15, %v898_v9  ;;  %1388 = vmatpush3.bf16.msra.mxu1 %v1150_v62 }
 0x201   :  { %1389 = vmatprep.subr.bf16.mxu1 %v1744_v1 }
 0x202   :  { %v1151_v58 = vpack.c.bf16 %v1122_v20, %v1121_v7 }
 0x204   :  { %1390 = vmatpush3.bf16.msra.mxu1 %v1151_v58 }
 0x207   :  { %1392 = vmatmul.mubr.msk.bf16.vlgmr.msra.gmra.mrb[16].mxu1 %vm1304_vm7, %v1747_v13 }
 0x2da   :  { %v1186_v8 = vpop.f32.mrb[16].mxu1 }
 0x2db   :  { %v1193_v6 = vadd.f32 %v1186_v8, %v1142_v5  ;;  %v1393_v23 = vpop.f32.mrb[17].mxu1 }
 0x2dc   :  { %v1189_v26 = vpop.f32.mrb[18].mxu1 }
 0x2dd   :  { %1195 = vst.msk [vmem:[#allocation13] sm:$0xff] %vm109_vm0, %v1193_v6  ;;  %v1194_v21 = vadd.f32 %v1189_v26, %v1143_v22  ;;  %v1394_v27 = vpop.f32.mrb[19].mxu1 }
 0x2df   :  { %1196 = vst.msk [vmem:[#allocation13 + $0x8] sm:$0xff] %vm109_vm0, %v1194_v21 }
 0x2e0   :  { %1712 = shalt.err (!%p1709_p10)
}
 0x2e1   :  { %s1713_s25 = scalar_lea.hbm %s2197_s6, 256 }
 0x2e2   :  { %p1714_p11 = scmp.ne.s32.totalorder %s2197_s6, %s1713_s25  ;;  %p1717_p12 = scmp.lt.u32.totalorder %s1713_s25, %s2197_s6 }
 0x2e4   :  { %p1719_p13 = pnand %p1717_p12, %p1714_p11 }
 0x2e6   :  { %1722 = shalt.err (!%p1719_p13)
}
 0x2e7   :  { %1208 = dma.vmem_to_hbm [thread:$0]  %s1203_s1, 256, %s2197_s6, [#allocation4], %s1740_s2, %s1740_s2, %s1741_s10  }
 0x2e8   :  { %1731 = dma.done.wait [#allocation4], 256  }
 0x2e9   :  { %1732 = vsyncadd [#allocation4], 4294967040 }
 0x2ea   :  { %1212 = vsyncpa [#allocation3], 1 }
 0x2eb   :  { %1213 = vsyncpa [#allocation6], 1 }
 0x2ec   :  { %1214 = vsyncpa [#allocation9], 1 }
 0x2ed   :  { %1215 = vsyncpa [#allocation12], 1 }
 0x2ee   :  { %1216 = vsyncpa [#allocation4], 1 }

</bundles_post_ra>
